<compile_context>
chip_gen: v7x
topology: tpu7x:2x2x1
jax: 0.10.0
libtpu: 0.0.40
codegen_flags: <defaults>
</compile_context>

<pallas_src>
import math

import jax
import jax.numpy as jnp
from jax.experimental import pallas as pl
from jax.experimental.pallas import tpu as pltpu


def _round_up(n: int, m: int) -> int:
    return (n + m - 1) // m * m


# ------------------------------------------------------------------ kernel ---
def mlp_kernel(x_ref, w1_ref, b1_ref, w2_ref, b2_ref, w3_ref, b3_ref, o_ref):
    """Fused 2-hidden-layer MLP forward for one batch tile.

    x arrives as f32 and is cast to bf16 in-kernel; weights are bf16 (MXU-native),
    accumulation + bias/ReLU/sigmoid epilogue in f32 on the VPU/EUP.
    """
    x = x_ref[...].astype(jnp.bfloat16)                      # in-kernel cast (hidden under matmul)
    # hidden layer 1: Linear -> ReLU   (Dropout is identity at inference)
    h = jnp.dot(x, w1_ref[...], preferred_element_type=jnp.float32) + b1_ref[...]
    h = jnp.maximum(h, 0.0).astype(jnp.bfloat16)
    # hidden layer 2: Linear -> ReLU
    h = jnp.dot(h, w2_ref[...], preferred_element_type=jnp.float32) + b2_ref[...]
    h = jnp.maximum(h, 0.0).astype(jnp.bfloat16)
    # output layer: Linear -> Sigmoid (numerically-stable two-sided form; exp + rcp on EUP)
    z = jnp.dot(h, w3_ref[...], preferred_element_type=jnp.float32) + b3_ref[...]
    e = jnp.exp(-jnp.abs(z))                                  # in (0, 1], never overflows
    num = jnp.where(z >= 0.0, 1.0, e)
    o_ref[...] = (num * pl.reciprocal(1.0 + e, approx=True)).astype(o_ref.dtype)


# ------------------------------------------------------- one-time param prep ---
def prepare_params(params, *, feature_align=128):
    """One-time preprocessing, hoisted out of the per-call forward.

    Zero-pads feature dims to a multiple of `feature_align` (lane-dense stores; use 256 on
    v6e/v7x if the hidden dims are large enough to be MXU-bound) and casts weights to bf16.
    Padded columns/rows are exact zeros (ReLU(0)=0, zero weight rows contribute 0).

    params = ((w1, b1), (w2, b2), (w3, b3)); wi: [in, out], bi: [1, out] (unpadded, f32).
    """
    (w1, b1), (w2, b2), (w3, b3) = params
    in_dim = w1.shape[0]
    h1, h2, out_dim = w1.shape[1], w2.shape[1], w3.shape[1]
    h1p = _round_up(h1, feature_align)
    h2p = _round_up(h2, feature_align)
    outp = _round_up(out_dim, feature_align)

    def pad2(a, rows, cols, dtype):
        return jnp.pad(a, ((0, rows - a.shape[0]), (0, cols - a.shape[1]))).astype(dtype)

    prepared = {
        "w1": pad2(w1, in_dim, h1p, jnp.bfloat16), "b1": pad2(b1, 1, h1p, jnp.float32),
        "w2": pad2(w2, h1p, h2p, jnp.bfloat16),    "b2": pad2(b2, 1, h2p, jnp.float32),
        "w3": pad2(w3, h2p, outp, jnp.bfloat16),   "b3": pad2(b3, 1, outp, jnp.float32),
        "out_dim": out_dim,
    }
    return prepared


# ------------------------------------------------------------- tile selection ---
def _pick_batch_tile(batch, block_batch=512, max_waste=0.125):
    """Largest multiple-of-8 batch tile <= block_batch keeping padding waste <= max_waste.

    Note: on v7x (2 TensorCores) prefer a block_batch that yields >= 2 grid steps so
    dimension_semantics=("parallel",) can shard the grid across both cores.
    """
    upper = max(8, min(block_batch, _round_up(batch, 8)))
    best_tb, best_waste = upper, None
    tb = upper
    while tb >= 8:
        padded = _round_up(batch, tb)
        waste = (padded - batch) / padded
        if waste <= max_waste:
            return tb
        if best_waste is None or waste < best_waste:
            best_tb, best_waste = tb, waste
        tb -= 8
    return best_tb


# ---------------------------------------------------------------- forward pass ---
def feedforward_nn_forward(x, prepared, *, block_batch=512, out_dtype=jnp.bfloat16):
    """x: [batch, in_dim] f32 (or bf16); prepared: output of prepare_params()."""
    w1p, b1p = prepared["w1"], prepared["b1"]
    w2p, b2p = prepared["w2"], prepared["b2"]
    w3p, b3p = prepared["w3"], prepared["b3"]
    out_dim = prepared["out_dim"]

    batch, in_dim = x.shape
    assert in_dim == w1p.shape[0], "x feature dim does not match prepared weights"
    h1p, h2p, outp = w1p.shape[1], w2p.shape[1], w3p.shape[1]

    # Batch tiling: adaptive tile (multiple of 8), padded rows sliced away below.
    tb = _pick_batch_tile(batch, block_batch)
    padded_batch = _round_up(batch, tb)
    xp = x if padded_batch == batch else jnp.pad(x, ((0, padded_batch - batch), (0, 0)))
    grid = (padded_batch // tb,)

    # Explicit VMEM budget: resident weights (x2 headroom for the double-buffered fallback),
    # double-buffered x / out tiles, activation scratch, +25% slack.  Capped under v7x's 64 MiB.
    x_bytes = jnp.dtype(xp.dtype).itemsize
    o_bytes = jnp.dtype(out_dtype).itemsize
    resident_bytes = (w1p.size + w2p.size + w3p.size) * 2 + (b1p.size + b2p.size + b3p.size) * 4
    streamed_bytes = 2 * tb * in_dim * x_bytes + 2 * tb * outp * o_bytes
    activ_bytes = tb * (h1p + h2p) * 4 + tb * max(h1p, h2p) * 2
    needed = 2 * resident_bytes + streamed_bytes + activ_bytes
    vmem_limit = int(min(max(needed * 1.25, 8 * 1024 * 1024), 100 * 1024 * 1024))

    flops = 2 * padded_batch * (in_dim * h1p + h1p * h2p + h2p * outp)
    bytes_accessed = (
        xp.size * x_bytes
        + (w1p.size + w2p.size + w3p.size) * 2
        + (b1p.size + b2p.size + b3p.size) * 4
        + padded_batch * outp * o_bytes
    )
    cost = pl.CostEstimate(
        flops=flops,
        transcendentals=2 * padded_batch * outp,  # exp + approx reciprocal
        bytes_accessed=bytes_accessed,
    )
    cparams = pltpu.CompilerParams(
        dimension_semantics=("parallel",),        # megacore sharding over batch tiles on v7x
        vmem_limit_bytes=vmem_limit,
    )

    def _run(single_buffer_weights: bool):
        if single_buffer_weights:
            # Constant index_map => block never changes; single buffer halves resident VMEM.
            def resident(shape):
                return pl.BlockSpec(shape, lambda i: (0, 0), pipeline_mode=pl.Buffered(1))
        else:
            def resident(shape):
                return pl.BlockSpec(shape, lambda i: (0, 0))

        in_specs = [
            pl.BlockSpec((tb, in_dim), lambda i: (i, 0)),   # x: pipelined (double-buffered) tiles
            resident((in_dim, h1p)), resident((1, h1p)),    # weights/biases: resident in VMEM
            resident((h1p, h2p)), resident((1, h2p)),
            resident((h2p, outp)), resident((1, outp)),
        ]
        out_spec = pl.BlockSpec((tb, outp), lambda i: (i, 0))  # lane-dense (outp % 128 == 0)

        return pl.pallas_call(
            mlp_kernel,
            out_shape=jax.ShapeDtypeStruct((padded_batch, outp), out_dtype),
            grid=grid,
            in_specs=in_specs,
            out_specs=out_spec,
            compiler_params=cparams,
            cost_estimate=cost,
        )(xp, w1p, b1p, w2p, b2p, w3p, b3p)

    try:
        out = _run(True)
    except Exception:
        # pipeline_mode=pl.Buffered(1) unsupported on this build: fall back to default buffering.
        out = _run(False)

    return out[:batch, :out_dim]


# --------------------------------------------------------------- init / reference ---
def init_params(key, input_dim, hidden_dims, output_dim, weight_decay=0.0001):
    """Deterministic init mirroring the PyTorch module:
       - weights: kaiming_uniform_ (bound = sqrt(6 / fan_in)), then += weight_decay
       - biases : PyTorch Linear default uniform(-1/sqrt(fan_in), 1/sqrt(fan_in))
       Weights stored transposed ([in, out]) for x @ W."""
    dims = [input_dim] + list(hidden_dims) + [output_dim]
    params = []
    for fan_in, fan_out in zip(dims[:-1], dims[1:]):
        key, kw, kb = jax.random.split(key, 3)
        w_bound = math.sqrt(6.0 / fan_in)
        b_bound = 1.0 / math.sqrt(fan_in)
        w = jax.random.uniform(kw, (fan_in, fan_out), jnp.float32, -w_bound, w_bound)
        w = w + weight_decay
        b = jax.random.uniform(kb, (1, fan_out), jnp.float32, -b_bound, b_bound)
        params.append((w, b))
    return tuple(params)


def reference_forward(x, params):
    """Plain-JAX reference matching the kernel's bf16-matmul / f32-accumulate numerics."""
    (w1, b1), (w2, b2), (w3, b3) = params

    def mm(a, w):
        return jnp.dot(a.astype(jnp.bfloat16), w.astype(jnp.bfloat16),
                       preferred_element_type=jnp.float32)

    h = jnp.maximum(mm(x, w1) + b1, 0.0)
    h = jnp.maximum(mm(h, w2) + b2, 0.0)
    return jax.nn.sigmoid(mm(h, w3) + b3)


if __name__ == "__main__":
    # Small shapes consistent with the module: input_dim=32, hidden_dims=[64, 64], output_dim=8
    batch, input_dim, hidden_dims, output_dim = 8, 32, (64, 64), 8

    key = jax.random.PRNGKey(0)
    key, kx = jax.random.split(key)
    x = jax.random.normal(kx, (batch, input_dim), dtype=jnp.float32)

    params = init_params(key, input_dim, hidden_dims, output_dim, weight_decay=0.0001)

    # One-time weight preprocessing (pad + bf16 cast), hoisted out of the forward pass.
    prepared = jax.block_until_ready(prepare_params(params))

    out = feedforward_nn_forward(x, prepared)
    out = jax.block_until_ready(out)

    ref = reference_forward(x, params)
    assert out.shape == (batch, output_dim)
    # bf16 matmuls + approx reciprocal + bf16 output vs bf16 matmuls + exact sigmoid reference.
    assert jnp.allclose(out.astype(jnp.float32), ref, atol=2e-2, rtol=2e-2), \
        "Pallas output mismatch vs JAX reference"

    # TODO(synk): training-mode Dropout / BatchNorm1d (batch_norm=True) not implemented; forward here is inference-mode.
    print("KERNEL_OK")
</pallas_src>

<mosaic_0001>
module attributes {stable_mosaic.version = 11 : i64} {
  func.func @mlp_kernel(%arg0: i32, %arg1: memref<8x32xf32, #tpu.memory_space<vmem>>, %arg2: memref<32x128xbf16, #tpu.memory_space<vmem>>, %arg3: memref<1x128xf32, #tpu.memory_space<vmem>>, %arg4: memref<128x128xbf16, #tpu.memory_space<vmem>>, %arg5: memref<1x128xf32, #tpu.memory_space<vmem>>, %arg6: memref<128x128xbf16, #tpu.memory_space<vmem>>, %arg7: memref<1x128xf32, #tpu.memory_space<vmem>>, %arg8: memref<8x128xbf16, #tpu.memory_space<vmem>>) attributes {dimension_semantics = [#tpu.dimension_semantics<parallel>], iteration_bounds = array<i64: 1>, scalar_prefetch = 0 : i64, scratch_operands = 0 : i64, tpu.core_type = #tpu.core_type<tc>, window_params = [{transform_indices = @transform_0, window_bounds = array<i64: 8, 32>}, {pipeline_mode = #tpu.pipeline_mode<synchronous>, transform_indices = @transform_1, window_bounds = array<i64: 32, 128>}, {pipeline_mode = #tpu.pipeline_mode<synchronous>, transform_indices = @transform_2, window_bounds = array<i64: 1, 128>}, {pipeline_mode = #tpu.pipeline_mode<synchronous>, transform_indices = @transform_3, window_bounds = array<i64: 128, 128>}, {pipeline_mode = #tpu.pipeline_mode<synchronous>, transform_indices = @transform_4, window_bounds = array<i64: 1, 128>}, {pipeline_mode = #tpu.pipeline_mode<synchronous>, transform_indices = @transform_5, window_bounds = array<i64: 128, 128>}, {pipeline_mode = #tpu.pipeline_mode<synchronous>, transform_indices = @transform_6, window_bounds = array<i64: 1, 128>}, {transform_indices = @transform_7, window_bounds = array<i64: 8, 128>}]} {
    %c0 = arith.constant 0 : index
    %c0_0 = arith.constant 0 : index
    %0 = vector.load %arg1[%c0, %c0_0] : memref<8x32xf32, #tpu.memory_space<vmem>>, vector<8x32xf32>
    %1 = arith.truncf %0 : vector<8x32xf32> to vector<8x32xbf16>
    %c0_1 = arith.constant 0 : index
    %c0_2 = arith.constant 0 : index
    %2 = vector.load %arg2[%c0_1, %c0_2] : memref<32x128xbf16, #tpu.memory_space<vmem>>, vector<32x128xbf16>
    %cst = arith.constant dense<0.000000e+00> : vector<8x128xf32>
    %3 = tpu.matmul %1, %2, %cst {dimension_numbers = #tpu.dot_dimension_numbers<[1], [0], [0], [1], [0, 0, 1, 1], [], []>} : vector<8x32xbf16>, vector<32x128xbf16>, vector<8x128xf32> -> vector<8x128xf32>
    %c0_3 = arith.constant 0 : index
    %c0_4 = arith.constant 0 : index
    %4 = vector.load %arg3[%c0_3, %c0_4] : memref<1x128xf32, #tpu.memory_space<vmem>>, vector<1x128xf32>
    %5 = vector.broadcast %4 : vector<1x128xf32> to vector<8x128xf32>
    %6 = arith.addf %3, %5 : vector<8x128xf32>
    %cst_5 = arith.constant 0.000000e+00 : f32
    %7 = vector.broadcast %cst_5 : f32 to vector<8x128xf32>
    %8 = arith.maximumf %6, %7 : vector<8x128xf32>
    %9 = arith.truncf %8 : vector<8x128xf32> to vector<8x128xbf16>
    %c0_6 = arith.constant 0 : index
    %c0_7 = arith.constant 0 : index
    %10 = vector.load %arg4[%c0_6, %c0_7] : memref<128x128xbf16, #tpu.memory_space<vmem>>, vector<128x128xbf16>
    %cst_8 = arith.constant dense<0.000000e+00> : vector<8x128xf32>
    %11 = tpu.matmul %9, %10, %cst_8 {dimension_numbers = #tpu.dot_dimension_numbers<[1], [0], [0], [1], [0, 0, 1, 1], [], []>} : vector<8x128xbf16>, vector<128x128xbf16>, vector<8x128xf32> -> vector<8x128xf32>
    %c0_9 = arith.constant 0 : index
    %c0_10 = arith.constant 0 : index
    %12 = vector.load %arg5[%c0_9, %c0_10] : memref<1x128xf32, #tpu.memory_space<vmem>>, vector<1x128xf32>
    %13 = vector.broadcast %12 : vector<1x128xf32> to vector<8x128xf32>
    %14 = arith.addf %11, %13 : vector<8x128xf32>
    %cst_11 = arith.constant 0.000000e+00 : f32
    %15 = vector.broadcast %cst_11 : f32 to vector<8x128xf32>
    %16 = arith.maximumf %14, %15 : vector<8x128xf32>
    %17 = arith.truncf %16 : vector<8x128xf32> to vector<8x128xbf16>
    %c0_12 = arith.constant 0 : index
    %c0_13 = arith.constant 0 : index
    %18 = vector.load %arg6[%c0_12, %c0_13] : memref<128x128xbf16, #tpu.memory_space<vmem>>, vector<128x128xbf16>
    %cst_14 = arith.constant dense<0.000000e+00> : vector<8x128xf32>
    %19 = tpu.matmul %17, %18, %cst_14 {dimension_numbers = #tpu.dot_dimension_numbers<[1], [0], [0], [1], [0, 0, 1, 1], [], []>} : vector<8x128xbf16>, vector<128x128xbf16>, vector<8x128xf32> -> vector<8x128xf32>
    %c0_15 = arith.constant 0 : index
    %c0_16 = arith.constant 0 : index
    %20 = vector.load %arg7[%c0_15, %c0_16] : memref<1x128xf32, #tpu.memory_space<vmem>>, vector<1x128xf32>
    %21 = vector.broadcast %20 : vector<1x128xf32> to vector<8x128xf32>
    %22 = arith.addf %19, %21 : vector<8x128xf32>
    %23 = math.absf %22 : vector<8x128xf32>
    %cst_17 = arith.constant 0.000000e+00 : f32
    %24 = vector.broadcast %cst_17 : f32 to vector<8x128xf32>
    %25 = arith.subf %24, %23 : vector<8x128xf32>
    %26 = math.exp %25 : vector<8x128xf32>
    %cst_18 = arith.constant 0.000000e+00 : f32
    %27 = vector.broadcast %cst_18 : f32 to vector<8x128xf32>
    %28 = arith.cmpf oge, %22, %27 : vector<8x128xf32>
    %cst_19 = arith.constant 1.000000e+00 : f32
    %29 = vector.broadcast %cst_19 : f32 to vector<8x128xf32>
    %30 = arith.select %28, %29, %26 : vector<8x128xi1>, vector<8x128xf32>
    %cst_20 = arith.constant 1.000000e+00 : f32
    %31 = vector.broadcast %cst_20 : f32 to vector<8x128xf32>
    %32 = arith.addf %31, %26 : vector<8x128xf32>
    %33 = tpu.reciprocal %32 {approx = true} : vector<8x128xf32> -> vector<8x128xf32>
    %34 = arith.mulf %30, %33 : vector<8x128xf32>
    %35 = arith.truncf %34 : vector<8x128xf32> to vector<8x128xbf16>
    %c0_21 = arith.constant 0 : index
    %c0_22 = arith.constant 0 : index
    %36 = vector.load %arg8[%c0_21, %c0_22] : memref<8x128xbf16, #tpu.memory_space<vmem>>, vector<8x128xbf16>
    tpu.vector_store %arg8[%c0_21, %c0_22], %35 {strides = array<i32>} : memref<8x128xbf16, #tpu.memory_space<vmem>>, vector<8x128xbf16>,
    return
  }
  func.func @transform_0(%arg0: i32) -> (i32, i32) {
    %c0_i32 = arith.constant 0 : i32
    %c0_i32_0 = arith.constant 0 : i32
    return %arg0, %c0_i32 : i32, i32
  }
  func.func @transform_1(%arg0: i32) -> (i32, i32) {
    %c0_i32 = arith.constant 0 : i32
    %c0_i32_0 = arith.constant 0 : i32
    %c0_i32_1 = arith.constant 0 : i32
    return %c0_i32, %c0_i32_0 : i32, i32
  }
  func.func @transform_2(%arg0: i32) -> (i32, i32) {
    %c0_i32 = arith.constant 0 : i32
    %c0_i32_0 = arith.constant 0 : i32
    %c0_i32_1 = arith.constant 0 : i32
    return %c0_i32, %c0_i32_0 : i32, i32
  }
  func.func @transform_3(%arg0: i32) -> (i32, i32) {
    %c0_i32 = arith.constant 0 : i32
    %c0_i32_0 = arith.constant 0 : i32
    %c0_i32_1 = arith.constant 0 : i32
    return %c0_i32, %c0_i32_0 : i32, i32
  }
  func.func @transform_4(%arg0: i32) -> (i32, i32) {
    %c0_i32 = arith.constant 0 : i32
    %c0_i32_0 = arith.constant 0 : i32
    %c0_i32_1 = arith.constant 0 : i32
    return %c0_i32, %c0_i32_0 : i32, i32
  }
  func.func @transform_5(%arg0: i32) -> (i32, i32) {
    %c0_i32 = arith.constant 0 : i32
    %c0_i32_0 = arith.constant 0 : i32
    %c0_i32_1 = arith.constant 0 : i32
    return %c0_i32, %c0_i32_0 : i32, i32
  }
  func.func @transform_6(%arg0: i32) -> (i32, i32) {
    %c0_i32 = arith.constant 0 : i32
    %c0_i32_0 = arith.constant 0 : i32
    %c0_i32_1 = arith.constant 0 : i32
    return %c0_i32, %c0_i32_0 : i32, i32
  }
  func.func @transform_7(%arg0: i32) -> (i32, i32) {
    %c0_i32 = arith.constant 0 : i32
    %c0_i32_0 = arith.constant 0 : i32
    return %arg0, %c0_i32 : i32, i32
  }
}

module attributes {stable_mosaic.version = 11 : i64} {
  func.func @mlp_kernel(%arg0: i32, %arg1: memref<8x32xf32, #tpu.memory_space<vmem>>, %arg2: memref<32x128xbf16, #tpu.memory_space<vmem>>, %arg3: memref<1x128xf32, #tpu.memory_space<vmem>>, %arg4: memref<128x128xbf16, #tpu.memory_space<vmem>>, %arg5: memref<1x128xf32, #tpu.memory_space<vmem>>, %arg6: memref<128x128xbf16, #tpu.memory_space<vmem>>, %arg7: memref<1x128xf32, #tpu.memory_space<vmem>>, %arg8: memref<8x128xbf16, #tpu.memory_space<vmem>>) attributes {dimension_semantics = [#tpu.dimension_semantics<parallel>], iteration_bounds = array<i64: 1>, scalar_prefetch = 0 : i64, scratch_operands = 0 : i64, tpu.core_type = #tpu.core_type<tc>, window_params = [{transform_indices = @transform_0, window_bounds = array<i64: 8, 32>}, {pipeline_mode = #tpu.pipeline_mode<synchronous>, transform_indices = @transform_1, window_bounds = array<i64: 32, 128>}, {pipeline_mode = #tpu.pipeline_mode<synchronous>, transform_indices = @transform_2, window_bounds = array<i64: 1, 128>}, {pipeline_mode = #tpu.pipeline_mode<synchronous>, transform_indices = @transform_3, window_bounds = array<i64: 128, 128>}, {pipeline_mode = #tpu.pipeline_mode<synchronous>, transform_indices = @transform_4, window_bounds = array<i64: 1, 128>}, {pipeline_mode = #tpu.pipeline_mode<synchronous>, transform_indices = @transform_5, window_bounds = array<i64: 128, 128>}, {pipeline_mode = #tpu.pipeline_mode<synchronous>, transform_indices = @transform_6, window_bounds = array<i64: 1, 128>}, {transform_indices = @transform_7, window_bounds = array<i64: 8, 128>}]} {
    %c0 = arith.constant 0 : index
    %c0_0 = arith.constant 0 : index
    %0 = vector.load %arg1[%c0, %c0_0] : memref<8x32xf32, #tpu.memory_space<vmem>>, vector<8x32xf32>
    %1 = arith.truncf %0 : vector<8x32xf32> to vector<8x32xbf16>
    %c0_1 = arith.constant 0 : index
    %c0_2 = arith.constant 0 : index
    %2 = vector.load %arg2[%c0_1, %c0_2] : memref<32x128xbf16, #tpu.memory_space<vmem>>, vector<32x128xbf16>
    %cst = arith.constant dense<0.000000e+00> : vector<8x128xf32>
    %3 = tpu.matmul %1, %2, %cst {dimension_numbers = #tpu.dot_dimension_numbers<[1], [0], [0], [1], [0, 0, 1, 1], [], []>} : vector<8x32xbf16>, vector<32x128xbf16>, vector<8x128xf32> -> vector<8x128xf32>
    %c0_3 = arith.constant 0 : index
    %c0_4 = arith.constant 0 : index
    %4 = vector.load %arg3[%c0_3, %c0_4] : memref<1x128xf32, #tpu.memory_space<vmem>>, vector<1x128xf32>
    %5 = vector.broadcast %4 : vector<1x128xf32> to vector<8x128xf32>
    %6 = arith.addf %3, %5 : vector<8x128xf32>
    %cst_5 = arith.constant 0.000000e+00 : f32
    %7 = vector.broadcast %cst_5 : f32 to vector<8x128xf32>
    %8 = arith.maximumf %6, %7 : vector<8x128xf32>
    %9 = arith.truncf %8 : vector<8x128xf32> to vector<8x128xbf16>
    %c0_6 = arith.constant 0 : index
    %c0_7 = arith.constant 0 : index
    %10 = vector.load %arg4[%c0_6, %c0_7] : memref<128x128xbf16, #tpu.memory_space<vmem>>, vector<128x128xbf16>
    %cst_8 = arith.constant dense<0.000000e+00> : vector<8x128xf32>
    %11 = tpu.matmul %9, %10, %cst_8 {dimension_numbers = #tpu.dot_dimension_numbers<[1], [0], [0], [1], [0, 0, 1, 1], [], []>} : vector<8x128xbf16>, vector<128x128xbf16>, vector<8x128xf32> -> vector<8x128xf32>
    %c0_9 = arith.constant 0 : index
    %c0_10 = arith.constant 0 : index
    %12 = vector.load %arg5[%c0_9, %c0_10] : memref<1x128xf32, #tpu.memory_space<vmem>>, vector<1x128xf32>
    %13 = vector.broadcast %12 : vector<1x128xf32> to vector<8x128xf32>
    %14 = arith.addf %11, %13 : vector<8x128xf32>
    %cst_11 = arith.constant 0.000000e+00 : f32
    %15 = vector.broadcast %cst_11 : f32 to vector<8x128xf32>
    %16 = arith.maximumf %14, %15 : vector<8x128xf32>
    %17 = arith.truncf %16 : vector<8x128xf32> to vector<8x128xbf16>
    %c0_12 = arith.constant 0 : index
    %c0_13 = arith.constant 0 : index
    %18 = vector.load %arg6[%c0_12, %c0_13] : memref<128x128xbf16, #tpu.memory_space<vmem>>, vector<128x128xbf16>
    %cst_14 = arith.constant dense<0.000000e+00> : vector<8x128xf32>
    %19 = tpu.matmul %17, %18, %cst_14 {dimension_numbers = #tpu.dot_dimension_numbers<[1], [0], [0], [1], [0, 0, 1, 1], [], []>} : vector<8x128xbf16>, vector<128x128xbf16>, vector<8x128xf32> -> vector<8x128xf32>
    %c0_15 = arith.constant 0 : index
    %c0_16 = arith.constant 0 : index
    %20 = vector.load %arg7[%c0_15, %c0_16] : memref<1x128xf32, #tpu.memory_space<vmem>>, vector<1x128xf32>
    %21 = vector.broadcast %20 : vector<1x128xf32> to vector<8x128xf32>
    %22 = arith.addf %19, %21 : vector<8x128xf32>
    %23 = math.absf %22 : vector<8x128xf32>
    %cst_17 = arith.constant 0.000000e+00 : f32
    %24 = vector.broadcast %cst_17 : f32 to vector<8x128xf32>
    %25 = arith.subf %24, %23 : vector<8x128xf32>
    %26 = math.exp %25 : vector<8x128xf32>
    %cst_18 = arith.constant 0.000000e+00 : f32
    %27 = vector.broadcast %cst_18 : f32 to vector<8x128xf32>
    %28 = arith.cmpf oge, %22, %27 : vector<8x128xf32>
    %cst_19 = arith.constant 1.000000e+00 : f32
    %29 = vector.broadcast %cst_19 : f32 to vector<8x128xf32>
    %30 = arith.select %28, %29, %26 : vector<8x128xi1>, vector<8x128xf32>
    %cst_20 = arith.constant 1.000000e+00 : f32
    %31 = vector.broadcast %cst_20 : f32 to vector<8x128xf32>
    %32 = arith.addf %31, %26 : vector<8x128xf32>
    %33 = tpu.reciprocal %32 {approx = true} : vector<8x128xf32> -> vector<8x128xf32>
    %34 = arith.mulf %30, %33 : vector<8x128xf32>
    %35 = arith.truncf %34 : vector<8x128xf32> to vector<8x128xbf16>
    %c0_21 = arith.constant 0 : index
    %c0_22 = arith.constant 0 : index
    %36 = vector.load %arg8[%c0_21, %c0_22] : memref<8x128xbf16, #tpu.memory_space<vmem>>, vector<8x128xbf16>
    tpu.vector_store %arg8[%c0_21, %c0_22], %35 {strides = array<i32>} : memref<8x128xbf16, #tpu.memory_space<vmem>>, vector<8x128xbf16>,
    return
  }
  func.func @transform_0(%arg0: i32) -> (i32, i32) {
    %c0_i32 = arith.constant 0 : i32
    %c0_i32_0 = arith.constant 0 : i32
    return %arg0, %c0_i32 : i32, i32
  }
  func.func @transform_1(%arg0: i32) -> (i32, i32) {
    %c0_i32 = arith.constant 0 : i32
    %c0_i32_0 = arith.constant 0 : i32
    %c0_i32_1 = arith.constant 0 : i32
    return %c0_i32, %c0_i32_0 : i32, i32
  }
  func.func @transform_2(%arg0: i32) -> (i32, i32) {
    %c0_i32 = arith.constant 0 : i32
    %c0_i32_0 = arith.constant 0 : i32
    %c0_i32_1 = arith.constant 0 : i32
    return %c0_i32, %c0_i32_0 : i32, i32
  }
  func.func @transform_3(%arg0: i32) -> (i32, i32) {
    %c0_i32 = arith.constant 0 : i32
    %c0_i32_0 = arith.constant 0 : i32
    %c0_i32_1 = arith.constant 0 : i32
    return %c0_i32, %c0_i32_0 : i32, i32
  }
  func.func @transform_4(%arg0: i32) -> (i32, i32) {
    %c0_i32 = arith.constant 0 : i32
    %c0_i32_0 = arith.constant 0 : i32
    %c0_i32_1 = arith.constant 0 : i32
    return %c0_i32, %c0_i32_0 : i32, i32
  }
  func.func @transform_5(%arg0: i32) -> (i32, i32) {
    %c0_i32 = arith.constant 0 : i32
    %c0_i32_0 = arith.constant 0 : i32
    %c0_i32_1 = arith.constant 0 : i32
    return %c0_i32, %c0_i32_0 : i32, i32
  }
  func.func @transform_6(%arg0: i32) -> (i32, i32) {
    %c0_i32 = arith.constant 0 : i32
    %c0_i32_0 = arith.constant 0 : i32
    %c0_i32_1 = arith.constant 0 : i32
    return %c0_i32, %c0_i32_0 : i32, i32
  }
  func.func @transform_7(%arg0: i32) -> (i32, i32) {
    %c0_i32 = arith.constant 0 : i32
    %c0_i32_0 = arith.constant 0 : i32
    return %arg0, %c0_i32 : i32, i32
  }
}

</mosaic_0001>

<bundles_post_ra>
// kernel: tpu_custom_call.1
= control target key start
LH: loop header
LB: loop body
LE: loop exit
PB: predicated region body
PF: predicated region fallthrough
CT: control target
= control target key end

     0   :  { %12 = vsyncpa [#allocation3], 0  ;;  %s795_s0 = inlined_call_operand.hbm [shape: f32[8,32], index: 0, kind: input, shape index: {}]   ;;  %s796_s1 = inlined_call_operand.hbm [shape: bf16[32,128], index: 1, kind: input, shape index: {}]   ;;  %s797_s2 = inlined_call_operand.vmem [shape: f32[1,128], index: 2, kind: input, shape index: {}]   ;;  %s798_s3 = inlined_call_operand.hbm [shape: bf16[128,128], index: 3, kind: input, shape index: {}]   ;;  %s799_s4 = inlined_call_operand.vmem [shape: f32[1,128], index: 4, kind: input, shape index: {}]   ;;  %s800_s5 = inlined_call_operand.hbm [shape: bf16[128,128], index: 5, kind: input, shape index: {}]   ;;  %s801_s6 = inlined_call_operand.vmem [shape: f32[1,128], index: 6, kind: input, shape index: {}]   ;;  %s802_s7 = inlined_call_operand.hbm [shape: bf16[8,128], index: 7, kind: output, shape index: {}]  }
   0x1   :  { %13 = vsyncpa [#allocation6], 0 }
   0x2   :  { %14 = vsyncpa [#allocation9], 0 }
   0x3   :  { %15 = vsyncpa [#allocation4], 0  ;;  %s644_s24 = smov [#allocation5]   ;;  %s526_s28 = scalar_lea.hbm %s796_s1, 256 }
   0x4   :  { %s31_s25 = sshll.u32 %s644_s24, 4  ;;  %p527_p0 = scmp.ne.s32.totalorder %s796_s1, %s526_s28  ;;  %s32_s25 = int_to_ptr.vmem [resolvable:$true] %s31_s25 }
   0x5   :  { %p530_p1 = scmp.lt.u32.totalorder %s526_s28, %s796_s1 }
   0x7   :  { %p532_p2 = pnand %p530_p1, %p527_p0 }
   0x9   :  { %535 = shalt.err (!%p532_p2)
}
   0xa   :  { %s536_s10 = scalar_lea.vmem %s32_s25, 256  ;;  %p541_p4 = scmp.lt.s32.totalorder %s32_s25, %s32_s25 }
   0xb   :  { %p537_p3 = scmp.ne.s32.totalorder %s32_s25, %s536_s10  ;;  %p542_p5 = scmp.lt.s32.totalorder %s536_s10, %s536_s10 }
   0xd   :  { %p543_p6 = por %p542_p5, %p541_p4 }
   0xf   :  { %p544_p7 = pnand %p543_p6, %p537_p3 }
  0x11   :  { %547 = shalt.err (!%p544_p7)
}
  0x12   :  { %s645_s11 = smov 64   ;;  %s646_s12 = smov 4  }
  0x13   :  { %37 = dma.hbm_to_vmem [thread:$0]  %s796_s1, 256, %s32_s25, [#allocation6], %s645_s11, %s645_s11, %s646_s12  }
  0x14   :  { %s647_s15 = smov [#allocation2]   ;;  %s648_s17 = smov [#allocation7]  }
  0x15   :  { %s22_s16 = sshll.u32 %s647_s15, 4  ;;  %s45_s18 = sshll.u32 %s648_s17, 4  ;;  %s23_s16 = int_to_ptr.vmem [resolvable:$true] %s22_s16  ;;  %s46_s18 = int_to_ptr.vmem [resolvable:$true] %s45_s18 }
  0x16   :  { %s548_s21 = scalar_lea.hbm %s795_s0, 128 }
  0x17   :  { %p549_p8 = scmp.ne.s32.totalorder %s795_s0, %s548_s21  ;;  %p552_p9 = scmp.lt.u32.totalorder %s548_s21, %s795_s0 }
  0x19   :  { %p554_p10 = pnand %p552_p9, %p549_p8 }
  0x1b   :  { %557 = shalt.err (!%p554_p10)
}
  0x1c   :  { %s558_s1 = scalar_lea.vmem %s23_s16, 128  ;;  %p563_p12 = scmp.lt.s32.totalorder %s23_s16, %s23_s16 }
  0x1d   :  { %p559_p11 = scmp.ne.s32.totalorder %s23_s16, %s558_s1  ;;  %p564_p13 = scmp.lt.s32.totalorder %s558_s1, %s558_s1 }
  0x1f   :  { %p565_p0 = por %p564_p13, %p563_p12 }
  0x21   :  { %p566_p1 = pnand %p565_p0, %p559_p11 }
  0x23   :  { %569 = shalt.err (!%p566_p1)
}
  0x24   :  { %25 = dma.hbm_to_vmem [thread:$0]  %s795_s0, 128, %s23_s16, [#allocation3]  }
  0x25   :  { %s570_s30 = scalar_lea.hbm %s798_s3, 1024 }
  0x26   :  { %p571_p2 = scmp.ne.s32.totalorder %s798_s3, %s570_s30  ;;  %p574_p3 = scmp.lt.u32.totalorder %s570_s30, %s798_s3 }
  0x28   :  { %p576_p4 = pnand %p574_p3, %p571_p2 }
  0x2a   :  { %579 = shalt.err (!%p576_p4)
}
  0x2b   :  { %s580_s14 = scalar_lea.vmem %s46_s18, 1024  ;;  %p585_p6 = scmp.lt.s32.totalorder %s46_s18, %s46_s18 }
  0x2c   :  { %p581_p5 = scmp.ne.s32.totalorder %s46_s18, %s580_s14  ;;  %p586_p7 = scmp.lt.s32.totalorder %s580_s14, %s580_s14 }
  0x2e   :  { %p587_p8 = por %p586_p7, %p585_p6 }
  0x30   :  { %p588_p9 = pnand %p587_p8, %p581_p5 }
  0x32   :  { %591 = shalt.err (!%p588_p9)
}
  0x33   :  { %51 = dma.hbm_to_vmem [thread:$0]  %s798_s3, 1024, %s46_s18, [#allocation6], %s645_s11, %s645_s11, %s646_s12  }
  0x34   :  { %s649_s16 = smov [#allocation8]   ;;  %s592_s21 = scalar_lea.hbm %s800_s5, 1024 }
  0x35   :  { %s59_s17 = sshll.u32 %s649_s16, 4  ;;  %p593_p10 = scmp.ne.s32.totalorder %s800_s5, %s592_s21  ;;  %s60_s17 = int_to_ptr.vmem [resolvable:$true] %s59_s17 }
  0x36   :  { %p596_p11 = scmp.lt.u32.totalorder %s592_s21, %s800_s5 }
  0x38   :  { %p598_p12 = pnand %p596_p11, %p593_p10 }
  0x3a   :  { %601 = shalt.err (!%p598_p12)
}
  0x3b   :  { %s602_s1 = scalar_lea.vmem %s60_s17, 1024  ;;  %p607_p0 = scmp.lt.s32.totalorder %s60_s17, %s60_s17 }
  0x3c   :  { %p603_p13 = scmp.ne.s32.totalorder %s60_s17, %s602_s1  ;;  %p608_p1 = scmp.lt.s32.totalorder %s602_s1, %s602_s1 }
  0x3e   :  { %p609_p2 = por %p608_p1, %p607_p0 }
  0x40   :  { %p610_p3 = pnand %p609_p2, %p603_p13 }
  0x42   :  { %613 = shalt.err (!%p610_p3)
}
  0x43   :  { %65 = dma.hbm_to_vmem [thread:$0]  %s800_s5, 1024, %s60_s17, [#allocation9], %s645_s11, %s645_s11, %s646_s12  }
  0x44   :  { %636 = dma.done.wait [#allocation3], 128  }
  0x45   :  { %637 = vsyncadd [#allocation3], 4294967168 }
  0x46   :  { %638 = dma.done.wait [#allocation6], 1280  }
  0x47   :  { %639 = vsyncadd [#allocation6], 4294966016 }
  0x48   :  { %640 = dma.done.wait [#allocation9], 1024  }
  0x49   :  { %641 = vsyncadd [#allocation9], 4294966272  ;;  %v650_v0 = vmov 0.0   ;;  %vm651_vm0 = vmmov 0   ;;  %v504_v1 = vld [vmem:[#allocation5] sm:$0xff]   ;;  %v505_v2 = vld [vmem:[#allocation5 + $0x8] sm:$0xff]  }
  0x4a   :  { %447 = vmatprep.subr.bf16.mxu0 %v650_v0  ;;  %451 = vmatprep.mubr.msk.bf16.mxu0 %vm651_vm0, %v650_v0  ;;  %v81_v3 = vld [vmem:[#allocation2] sm:$0xff]  ;;  %v506_v4 = vld [vmem:[#allocation7] sm:$0xff]   ;;  %vm106_vm1 = vcmask 261120   ;;  %v508_v7 = vld [vmem:[#allocation7 + $0x10] sm:$0xff]  }
  0x4b   :  { %455 = vmatprep.subr.bf16.mxu1 %v650_v0  ;;  %471 = vmatprep.mubr.msk.bf16.mxu1 %vm651_vm0, %v650_v0  ;;  %v82_v5 = vpack.c.bf16 %v81_v3, %v81_v3  ;;  %v507_v6 = vld [vmem:[#allocation7 + $0x8] sm:$0xff]   ;;  %v509_v8 = vld [vmem:[#allocation7 + $0x18] sm:$0xff]   ;;  %v510_v9 = vld [vmem:[#allocation7 + $0x20] sm:$0xff]  }
  0x4c   :  { %448 = vmatpush3.bf16.msra.mxu0 %v504_v1  ;;  %456 = vmatpush3.bf16.msra.mxu1 %v506_v4  ;;  %v511_v10 = vld [vmem:[#allocation7 + $0x28] sm:$0xff]   ;;  %v512_v11 = vld [vmem:[#allocation7 + $0x30] sm:$0xff]   ;;  %v513_v12 = vld [vmem:[#allocation7 + $0x38] sm:$0xff]  }
  0x4d   :  { %449 = vmatprep.subr.bf16.mxu0 %v650_v0  ;;  %457 = vmatprep.subr.bf16.mxu1 %v650_v0  ;;  %v514_v13 = vld [vmem:[#allocation8] sm:$0xff]   ;;  %v515_v14 = vld [vmem:[#allocation8 + $0x8] sm:$0xff]   ;;  %v516_v15 = vld [vmem:[#allocation8 + $0x10] sm:$0xff]  }
  0x4e   :  { %v517_v16 = vld [vmem:[#allocation8 + $0x18] sm:$0xff]   ;;  %v518_v17 = vld [vmem:[#allocation8 + $0x20] sm:$0xff]   ;;  %v519_v18 = vld [vmem:[#allocation8 + $0x28] sm:$0xff]  }
  0x4f   :  { %v404_v19 = vld [vmem:[%s797_s2] ss:$0 sm:$0xff]  ;;  %v520_v27 = vld [vmem:[#allocation8 + $0x30] sm:$0xff]   ;;  %v521_v28 = vld [vmem:[#allocation8 + $0x38] sm:$0xff]  }
  0x50   :  { %450 = vmatpush3.bf16.msra.mxu0 %v505_v2  ;;  %458 = vmatpush3.bf16.msra.mxu1 %v507_v6  ;;  %v408_v29 = vld [vmem:[%s799_s4] ss:$0 sm:$0xff]  ;;  %s652_s4 = smov [#allocation10]  }
  0x51   :  { %475 = vmatprep.subr.bf16.mxu0 %v650_v0  ;;  %459 = vmatprep.subr.bf16.mxu1 %v650_v0  ;;  %v417_v37 = vld [vmem:[%s801_s6] ss:$0 sm:$0xff]  ;;  %s393_s28 = sshll.u32 %s652_s4, 4  ;;  %s394_s28 = int_to_ptr.vmem [resolvable:$true] %s393_s28 }
  0x52   :  { %s614_s6 = scalar_lea.vmem %s394_s28, 64  ;;  %p619_p5 = scmp.lt.s32.totalorder %s394_s28, %s394_s28 }
  0x53   :  { %452 = vmatmul.mubr.msk.bf16.vlgmr.msra.gmra.mrb[0].mxu0 %vm106_vm1, %v82_v5  ;;  %p615_p4 = scmp.ne.s32.totalorder %s394_s28, %s614_s6  ;;  %p620_p6 = scmp.lt.s32.totalorder %s614_s6, %s614_s6 }
  0x54   :  { %491 = vmatprep.mubr.msk.bf16.mxu0 %vm651_vm0, %v650_v0  ;;  %460 = vmatpush3.bf16.msra.mxu1 %v508_v7 }
  0x55   :  { %461 = vmatprep.subr.bf16.mxu1 %v650_v0  ;;  %476 = vmatpush3.bf16.msra.mxu0 %v514_v13  ;;  %p621_p7 = por %p620_p6, %p619_p5 }
  0x56   :  { %477 = vmatprep.subr.bf16.mxu0 %v650_v0 }
  0x57   :  { %p622_p8 = pnand %p621_p7, %p615_p4 }
  0x58   :  { %462 = vmatpush3.bf16.msra.mxu1 %v509_v8 }
  0x59   :  { %463 = vmatprep.subr.bf16.mxu1 %v650_v0  ;;  %478 = vmatpush3.bf16.msra.mxu0 %v515_v14 }
  0x5a   :  { %479 = vmatprep.subr.bf16.mxu0 %v650_v0 }
  0x5c   :  { %464 = vmatpush3.bf16.msra.mxu1 %v510_v9 }
  0x5d   :  { %465 = vmatprep.subr.bf16.mxu1 %v650_v0  ;;  %480 = vmatpush3.bf16.msra.mxu0 %v516_v15 }
  0x5e   :  { %481 = vmatprep.subr.bf16.mxu0 %v650_v0 }
  0x60   :  { %466 = vmatpush3.bf16.msra.mxu1 %v511_v10 }
  0x61   :  { %467 = vmatprep.subr.bf16.mxu1 %v650_v0  ;;  %482 = vmatpush3.bf16.msra.mxu0 %v517_v16 }
  0x62   :  { %483 = vmatprep.subr.bf16.mxu0 %v650_v0 }
  0x64   :  { %468 = vmatpush3.bf16.msra.mxu1 %v512_v11 }
  0x65   :  { %469 = vmatprep.subr.bf16.mxu1 %v650_v0  ;;  %484 = vmatpush3.bf16.msra.mxu0 %v518_v17 }
  0x66   :  { %485 = vmatprep.subr.bf16.mxu0 %v650_v0 }
  0x68   :  { %470 = vmatpush3.bf16.msra.mxu1 %v513_v12 }
  0x69   :  { %486 = vmatpush3.bf16.msra.mxu0 %v519_v18 }
  0x6a   :  { %487 = vmatprep.subr.bf16.mxu0 %v650_v0 }
  0x6d   :  { %488 = vmatpush3.bf16.msra.mxu0 %v520_v27 }
  0x6e   :  { %489 = vmatprep.subr.bf16.mxu0 %v650_v0 }
  0x71   :  { %490 = vmatpush3.bf16.msra.mxu0 %v521_v28 }
 0x126   :  { %v144_v20 = vpop.f32.mrb[0].mxu0 }
 0x127   :  { %v145_v21 = vadd.f32 %v404_v19, %v144_v20  ;;  %v453_v22 = vpop.f32.mrb[1].mxu0 }
 0x128   :  { %v147_v23 = vpop.f32.mrb[2].mxu0 }
 0x129   :  { %v150_v24 = vmax.f32 %v145_v21, 0.0  ;;  %v454_v25 = vpop.f32.mrb[3].mxu0 }
 0x12b   :  { %v151_v26 = vpack.c.bf16 %v150_v24, %v150_v24 }
 0x12d   :  { %472 = vmatmul.mubr.bf16.vlgmr.msra.gmra.mrb[0].mxu1 %v151_v26 }
 0x200   :  { %v257_v30 = vpop.f32.mrb[0].mxu1 }
 0x201   :  { %v258_v31 = vadd.f32 %v408_v29, %v257_v30  ;;  %v473_v32 = vpop.f32.mrb[1].mxu1 }
 0x202   :  { %v260_v33 = vpop.f32.mrb[2].mxu1 }
 0x203   :  { %v263_v34 = vmax.f32 %v258_v31, 0.0  ;;  %v474_v35 = vpop.f32.mrb[3].mxu1 }
 0x205   :  { %v264_v36 = vpack.c.bf16 %v263_v34, %v263_v34 }
 0x207   :  { %492 = vmatmul.mubr.bf16.vlgmr.msra.gmra.mrb[4].mxu0 %v264_v36 }
 0x2da   :  { %v370_v38 = vpop.f32.mrb[4].mxu0 }
 0x2db   :  { %v371_v39 = vadd.f32 %v417_v37, %v370_v38  ;;  %v493_v40 = vpop.f32.mrb[5].mxu0 }
 0x2dc   :  { %v373_v41 = vpop.f32.mrb[6].mxu0 }
 0x2dd   :  { %v376_v42 = vand.u32 2147483647, %v371_v39  ;;  %v494_v43 = vpop.f32.mrb[7].mxu0  ;;  %vm380_vm2 = vcmp.ge.f32.partialorder %v371_v39, 0.0 }
 0x2df   :  { %v377_v44 = vsub.f32 0.0, %v376_v42 }
 0x2e1   :  { %v378_v45 = vmul.f32 1.442695, %v377_v44 }
 0x2e3   :  { %522 = vpow2.f32 %v378_v45 }
 0x2ed   :  { %v523_v46 = vpop.eup %522 }
 0x2ee   :  { %v382_v47 = vadd.f32 1.0, %v523_v46  ;;  %v381_v49 = vsel %vm380_vm2, 1.0, %v523_v46 }
 0x2f0   :  { %524 = vrcp.f32 %v382_v47 }
 0x2fa   :  { %v525_v48 = vpop.eup %524 }
 0x2fb   :  { %v384_v50 = vmul.f32 %v525_v48, %v381_v49 }
 0x2fd   :  { %v385_v51 = vpack.c.bf16 %v384_v50, %v384_v50 }
 0x2ff   :  { %386 = vst [vmem:[#allocation10] sm:$0xf] %v385_v51 }
 0x300   :  { %625 = shalt.err (!%p622_p8)
}
 0x301   :  { %s626_s8 = scalar_lea.hbm %s802_s7, 64 }
 0x302   :  { %p627_p9 = scmp.ne.s32.totalorder %s802_s7, %s626_s8  ;;  %p630_p10 = scmp.lt.u32.totalorder %s626_s8, %s802_s7 }
 0x304   :  { %p632_p11 = pnand %p630_p10, %p627_p9 }
 0x306   :  { %635 = shalt.err (!%p632_p11)
}
 0x307   :  { %396 = dma.vmem_to_hbm [thread:$0]  %s394_s28, 64, %s802_s7, [#allocation4]  }
 0x308   :  { %642 = dma.done.wait [#allocation4], 64  }
 0x309   :  { %643 = vsyncadd [#allocation4], 4294967232 }
 0x30a   :  { %400 = vsyncpa [#allocation3], 1 }
 0x30b   :  { %401 = vsyncpa [#allocation6], 1 }
 0x30c   :  { %402 = vsyncpa [#allocation9], 1 }
 0x30d   :  { %403 = vsyncpa [#allocation4], 1 }

// kernel: tpu_custom_call.1
= control target key start
LH: loop header
LB: loop body
LE: loop exit
PB: predicated region body
PF: predicated region fallthrough
CT: control target
= control target key end

     0   :  { %12 = vsyncpa [#allocation3], 0  ;;  %s795_s0 = inlined_call_operand.hbm [shape: f32[8,32], index: 0, kind: input, shape index: {}]   ;;  %s796_s1 = inlined_call_operand.hbm [shape: bf16[32,128], index: 1, kind: input, shape index: {}]   ;;  %s797_s2 = inlined_call_operand.vmem [shape: f32[1,128], index: 2, kind: input, shape index: {}]   ;;  %s798_s3 = inlined_call_operand.hbm [shape: bf16[128,128], index: 3, kind: input, shape index: {}]   ;;  %s799_s4 = inlined_call_operand.vmem [shape: f32[1,128], index: 4, kind: input, shape index: {}]   ;;  %s800_s5 = inlined_call_operand.hbm [shape: bf16[128,128], index: 5, kind: input, shape index: {}]   ;;  %s801_s6 = inlined_call_operand.vmem [shape: f32[1,128], index: 6, kind: input, shape index: {}]   ;;  %s802_s7 = inlined_call_operand.hbm [shape: bf16[8,128], index: 7, kind: output, shape index: {}]  }
   0x1   :  { %13 = vsyncpa [#allocation6], 0 }
   0x2   :  { %14 = vsyncpa [#allocation9], 0 }
   0x3   :  { %15 = vsyncpa [#allocation4], 0  ;;  %s644_s24 = smov [#allocation5]   ;;  %s526_s28 = scalar_lea.hbm %s796_s1, 256 }
   0x4   :  { %s31_s25 = sshll.u32 %s644_s24, 4  ;;  %p527_p0 = scmp.ne.s32.totalorder %s796_s1, %s526_s28  ;;  %s32_s25 = int_to_ptr.vmem [resolvable:$true] %s31_s25 }
   0x5   :  { %p530_p1 = scmp.lt.u32.totalorder %s526_s28, %s796_s1 }
   0x7   :  { %p532_p2 = pnand %p530_p1, %p527_p0 }
   0x9   :  { %535 = shalt.err (!%p532_p2)
}
   0xa   :  { %s536_s10 = scalar_lea.vmem %s32_s25, 256  ;;  %p541_p4 = scmp.lt.s32.totalorder %s32_s25, %s32_s25 }
   0xb   :  { %p537_p3 = scmp.ne.s32.totalorder %s32_s25, %s536_s10  ;;  %p542_p5 = scmp.lt.s32.totalorder %s536_s10, %s536_s10 }
   0xd   :  { %p543_p6 = por %p542_p5, %p541_p4 }
   0xf   :  { %p544_p7 = pnand %p543_p6, %p537_p3 }
  0x11   :  { %547 = shalt.err (!%p544_p7)
}
  0x12   :  { %s645_s11 = smov 64   ;;  %s646_s12 = smov 4  }
  0x13   :  { %37 = dma.hbm_to_vmem [thread:$0]  %s796_s1, 256, %s32_s25, [#allocation6], %s645_s11, %s645_s11, %s646_s12  }
  0x14   :  { %s647_s15 = smov [#allocation2]   ;;  %s648_s17 = smov [#allocation7]  }
  0x15   :  { %s22_s16 = sshll.u32 %s647_s15, 4  ;;  %s45_s18 = sshll.u32 %s648_s17, 4  ;;  %s23_s16 = int_to_ptr.vmem [resolvable:$true] %s22_s16  ;;  %s46_s18 = int_to_ptr.vmem [resolvable:$true] %s45_s18 }
  0x16   :  { %s548_s21 = scalar_lea.hbm %s795_s0, 128 }
  0x17   :  { %p549_p8 = scmp.ne.s32.totalorder %s795_s0, %s548_s21  ;;  %p552_p9 = scmp.lt.u32.totalorder %s548_s21, %s795_s0 }
  0x19   :  { %p554_p10 = pnand %p552_p9, %p549_p8 }
  0x1b   :  { %557 = shalt.err (!%p554_p10)
}
  0x1c   :  { %s558_s1 = scalar_lea.vmem %s23_s16, 128  ;;  %p563_p12 = scmp.lt.s32.totalorder %s23_s16, %s23_s16 }
  0x1d   :  { %p559_p11 = scmp.ne.s32.totalorder %s23_s16, %s558_s1  ;;  %p564_p13 = scmp.lt.s32.totalorder %s558_s1, %s558_s1 }
  0x1f   :  { %p565_p0 = por %p564_p13, %p563_p12 }
  0x21   :  { %p566_p1 = pnand %p565_p0, %p559_p11 }
  0x23   :  { %569 = shalt.err (!%p566_p1)
}
  0x24   :  { %25 = dma.hbm_to_vmem [thread:$0]  %s795_s0, 128, %s23_s16, [#allocation3]  }
  0x25   :  { %s570_s30 = scalar_lea.hbm %s798_s3, 1024 }
  0x26   :  { %p571_p2 = scmp.ne.s32.totalorder %s798_s3, %s570_s30  ;;  %p574_p3 = scmp.lt.u32.totalorder %s570_s30, %s798_s3 }
  0x28   :  { %p576_p4 = pnand %p574_p3, %p571_p2 }
  0x2a   :  { %579 = shalt.err (!%p576_p4)
}
  0x2b   :  { %s580_s14 = scalar_lea.vmem %s46_s18, 1024  ;;  %p585_p6 = scmp.lt.s32.totalorder %s46_s18, %s46_s18 }
  0x2c   :  { %p581_p5 = scmp.ne.s32.totalorder %s46_s18, %s580_s14  ;;  %p586_p7 = scmp.lt.s32.totalorder %s580_s14, %s580_s14 }
  0x2e   :  { %p587_p8 = por %p586_p7, %p585_p6 }
  0x30   :  { %p588_p9 = pnand %p587_p8, %p581_p5 }
  0x32   :  { %591 = shalt.err (!%p588_p9)
}
  0x33   :  { %51 = dma.hbm_to_vmem [thread:$0]  %s798_s3, 1024, %s46_s18, [#allocation6], %s645_s11, %s645_s11, %s646_s12  }
  0x34   :  { %s649_s16 = smov [#allocation8]   ;;  %s592_s21 = scalar_lea.hbm %s800_s5, 1024 }
  0x35   :  { %s59_s17 = sshll.u32 %s649_s16, 4  ;;  %p593_p10 = scmp.ne.s32.totalorder %s800_s5, %s592_s21  ;;  %s60_s17 = int_to_ptr.vmem [resolvable:$true] %s59_s17 }
  0x36   :  { %p596_p11 = scmp.lt.u32.totalorder %s592_s21, %s800_s5 }
  0x38   :  { %p598_p12 = pnand %p596_p11, %p593_p10 }
  0x3a   :  { %601 = shalt.err (!%p598_p12)
}
  0x3b   :  { %s602_s1 = scalar_lea.vmem %s60_s17, 1024  ;;  %p607_p0 = scmp.lt.s32.totalorder %s60_s17, %s60_s17 }
  0x3c   :  { %p603_p13 = scmp.ne.s32.totalorder %s60_s17, %s602_s1  ;;  %p608_p1 = scmp.lt.s32.totalorder %s602_s1, %s602_s1 }
  0x3e   :  { %p609_p2 = por %p608_p1, %p607_p0 }
  0x40   :  { %p610_p3 = pnand %p609_p2, %p603_p13 }
  0x42   :  { %613 = shalt.err (!%p610_p3)
}
  0x43   :  { %65 = dma.hbm_to_vmem [thread:$0]  %s800_s5, 1024, %s60_s17, [#allocation9], %s645_s11, %s645_s11, %s646_s12  }
  0x44   :  { %636 = dma.done.wait [#allocation3], 128  }
  0x45   :  { %637 = vsyncadd [#allocation3], 4294967168 }
  0x46   :  { %638 = dma.done.wait [#allocation6], 1280  }
  0x47   :  { %639 = vsyncadd [#allocation6], 4294966016 }
  0x48   :  { %640 = dma.done.wait [#allocation9], 1024  }
  0x49   :  { %641 = vsyncadd [#allocation9], 4294966272  ;;  %v650_v0 = vmov 0.0   ;;  %vm651_vm0 = vmmov 0   ;;  %v504_v1 = vld [vmem:[#allocation5] sm:$0xff]   ;;  %v505_v2 = vld [vmem:[#allocation5 + $0x8] sm:$0xff]  }
  0x4a   :  { %447 = vmatprep.subr.bf16.mxu0 %v650_v0  ;;  %451 = vmatprep.mubr.msk.bf16.mxu0 %vm651_vm0, %v650_v0  ;;  %v81_v3 = vld [vmem:[#allocation2] sm:$0xff]  ;;  %v506_v4 = vld [vmem:[#allocation7] sm:$0xff]   ;;  %vm106_vm1 = vcmask 261120   ;;  %v508_v7 = vld [vmem:[#allocation7 + $0x10] sm:$0xff]  }
  0x4b   :  { %455 = vmatprep.subr.bf16.mxu1 %v650_v0  ;;  %471 = vmatprep.mubr.msk.bf16.mxu1 %vm651_vm0, %v650_v0  ;;  %v82_v5 = vpack.c.bf16 %v81_v3, %v81_v3  ;;  %v507_v6 = vld [vmem:[#allocation7 + $0x8] sm:$0xff]   ;;  %v509_v8 = vld [vmem:[#allocation7 + $0x18] sm:$0xff]   ;;  %v510_v9 = vld [vmem:[#allocation7 + $0x20] sm:$0xff]  }
  0x4c   :  { %448 = vmatpush3.bf16.msra.mxu0 %v504_v1  ;;  %456 = vmatpush3.bf16.msra.mxu1 %v506_v4  ;;  %v511_v10 = vld [vmem:[#allocation7 + $0x28] sm:$0xff]   ;;  %v512_v11 = vld [vmem:[#allocation7 + $0x30] sm:$0xff]   ;;  %v513_v12 = vld [vmem:[#allocation7 + $0x38] sm:$0xff]  }
  0x4d   :  { %449 = vmatprep.subr.bf16.mxu0 %v650_v0  ;;  %457 = vmatprep.subr.bf16.mxu1 %v650_v0  ;;  %v514_v13 = vld [vmem:[#allocation8] sm:$0xff]   ;;  %v515_v14 = vld [vmem:[#allocation8 + $0x8] sm:$0xff]   ;;  %v516_v15 = vld [vmem:[#allocation8 + $0x10] sm:$0xff]  }
  0x4e   :  { %v517_v16 = vld [vmem:[#allocation8 + $0x18] sm:$0xff]   ;;  %v518_v17 = vld [vmem:[#allocation8 + $0x20] sm:$0xff]   ;;  %v519_v18 = vld [vmem:[#allocation8 + $0x28] sm:$0xff]  }
  0x4f   :  { %v404_v19 = vld [vmem:[%s797_s2] ss:$0 sm:$0xff]  ;;  %v520_v27 = vld [vmem:[#allocation8 + $0x30] sm:$0xff]   ;;  %v521_v28 = vld [vmem:[#allocation8 + $0x38] sm:$0xff]  }
  0x50   :  { %450 = vmatpush3.bf16.msra.mxu0 %v505_v2  ;;  %458 = vmatpush3.bf16.msra.mxu1 %v507_v6  ;;  %v408_v29 = vld [vmem:[%s799_s4] ss:$0 sm:$0xff]  ;;  %s652_s4 = smov [#allocation10]  }
  0x51   :  { %475 = vmatprep.subr.bf16.mxu0 %v650_v0  ;;  %459 = vmatprep.subr.bf16.mxu1 %v650_v0  ;;  %v417_v37 = vld [vmem:[%s801_s6] ss:$0 sm:$0xff]  ;;  %s393_s28 = sshll.u32 %s652_s4, 4  ;;  %s394_s28 = int_to_ptr.vmem [resolvable:$true] %s393_s28 }
  0x52   :  { %s614_s6 = scalar_lea.vmem %s394_s28, 64  ;;  %p619_p5 = scmp.lt.s32.totalorder %s394_s28, %s394_s28 }
  0x53   :  { %452 = vmatmul.mubr.msk.bf16.vlgmr.msra.gmra.mrb[0].mxu0 %vm106_vm1, %v82_v5  ;;  %p615_p4 = scmp.ne.s32.totalorder %s394_s28, %s614_s6  ;;  %p620_p6 = scmp.lt.s32.totalorder %s614_s6, %s614_s6 }
  0x54   :  { %491 = vmatprep.mubr.msk.bf16.mxu0 %vm651_vm0, %v650_v0  ;;  %460 = vmatpush3.bf16.msra.mxu1 %v508_v7 }
  0x55   :  { %461 = vmatprep.subr.bf16.mxu1 %v650_v0  ;;  %476 = vmatpush3.bf16.msra.mxu0 %v514_v13  ;;  %p621_p7 = por %p620_p6, %p619_p5 }
  0x56   :  { %477 = vmatprep.subr.bf16.mxu0 %v650_v0 }
  0x57   :  { %p622_p8 = pnand %p621_p7, %p615_p4 }
  0x58   :  { %462 = vmatpush3.bf16.msra.mxu1 %v509_v8 }
  0x59   :  { %463 = vmatprep.subr.bf16.mxu1 %v650_v0  ;;  %478 = vmatpush3.bf16.msra.mxu0 %v515_v14 }
  0x5a   :  { %479 = vmatprep.subr.bf16.mxu0 %v650_v0 }
  0x5c   :  { %464 = vmatpush3.bf16.msra.mxu1 %v510_v9 }
  0x5d   :  { %465 = vmatprep.subr.bf16.mxu1 %v650_v0  ;;  %480 = vmatpush3.bf16.msra.mxu0 %v516_v15 }
  0x5e   :  { %481 = vmatprep.subr.bf16.mxu0 %v650_v0 }
  0x60   :  { %466 = vmatpush3.bf16.msra.mxu1 %v511_v10 }
  0x61   :  { %467 = vmatprep.subr.bf16.mxu1 %v650_v0  ;;  %482 = vmatpush3.bf16.msra.mxu0 %v517_v16 }
  0x62   :  { %483 = vmatprep.subr.bf16.mxu0 %v650_v0 }
  0x64   :  { %468 = vmatpush3.bf16.msra.mxu1 %v512_v11 }
  0x65   :  { %469 = vmatprep.subr.bf16.mxu1 %v650_v0  ;;  %484 = vmatpush3.bf16.msra.mxu0 %v518_v17 }
  0x66   :  { %485 = vmatprep.subr.bf16.mxu0 %v650_v0 }
  0x68   :  { %470 = vmatpush3.bf16.msra.mxu1 %v513_v12 }
  0x69   :  { %486 = vmatpush3.bf16.msra.mxu0 %v519_v18 }
  0x6a   :  { %487 = vmatprep.subr.bf16.mxu0 %v650_v0 }
  0x6d   :  { %488 = vmatpush3.bf16.msra.mxu0 %v520_v27 }
  0x6e   :  { %489 = vmatprep.subr.bf16.mxu0 %v650_v0 }
  0x71   :  { %490 = vmatpush3.bf16.msra.mxu0 %v521_v28 }
 0x126   :  { %v144_v20 = vpop.f32.mrb[0].mxu0 }
 0x127   :  { %v145_v21 = vadd.f32 %v404_v19, %v144_v20  ;;  %v453_v22 = vpop.f32.mrb[1].mxu0 }
 0x128   :  { %v147_v23 = vpop.f32.mrb[2].mxu0 }
 0x129   :  { %v150_v24 = vmax.f32 %v145_v21, 0.0  ;;  %v454_v25 = vpop.f32.mrb[3].mxu0 }
 0x12b   :  { %v151_v26 = vpack.c.bf16 %v150_v24, %v150_v24 }
 0x12d   :  { %472 = vmatmul.mubr.bf16.vlgmr.msra.gmra.mrb[0].mxu1 %v151_v26 }
 0x200   :  { %v257_v30 = vpop.f32.mrb[0].mxu1 }
 0x201   :  { %v258_v31 = vadd.f32 %v408_v29, %v257_v30  ;;  %v473_v32 = vpop.f32.mrb[1].mxu1 }
 0x202   :  { %v260_v33 = vpop.f32.mrb[2].mxu1 }
 0x203   :  { %v263_v34 = vmax.f32 %v258_v31, 0.0  ;;  %v474_v35 = vpop.f32.mrb[3].mxu1 }
 0x205   :  { %v264_v36 = vpack.c.bf16 %v263_v34, %v263_v34 }
 0x207   :  { %492 = vmatmul.mubr.bf16.vlgmr.msra.gmra.mrb[4].mxu0 %v264_v36 }
 0x2da   :  { %v370_v38 = vpop.f32.mrb[4].mxu0 }
 0x2db   :  { %v371_v39 = vadd.f32 %v417_v37, %v370_v38  ;;  %v493_v40 = vpop.f32.mrb[5].mxu0 }
 0x2dc   :  { %v373_v41 = vpop.f32.mrb[6].mxu0 }
 0x2dd   :  { %v376_v42 = vand.u32 2147483647, %v371_v39  ;;  %v494_v43 = vpop.f32.mrb[7].mxu0  ;;  %vm380_vm2 = vcmp.ge.f32.partialorder %v371_v39, 0.0 }
 0x2df   :  { %v377_v44 = vsub.f32 0.0, %v376_v42 }
 0x2e1   :  { %v378_v45 = vmul.f32 1.442695, %v377_v44 }
 0x2e3   :  { %522 = vpow2.f32 %v378_v45 }
 0x2ed   :  { %v523_v46 = vpop.eup %522 }
 0x2ee   :  { %v382_v47 = vadd.f32 1.0, %v523_v46  ;;  %v381_v49 = vsel %vm380_vm2, 1.0, %v523_v46 }
 0x2f0   :  { %524 = vrcp.f32 %v382_v47 }
 0x2fa   :  { %v525_v48 = vpop.eup %524 }
 0x2fb   :  { %v384_v50 = vmul.f32 %v525_v48, %v381_v49 }
 0x2fd   :  { %v385_v51 = vpack.c.bf16 %v384_v50, %v384_v50 }
 0x2ff   :  { %386 = vst [vmem:[#allocation10] sm:$0xf] %v385_v51 }
 0x300   :  { %625 = shalt.err (!%p622_p8)
}
 0x301   :  { %s626_s8 = scalar_lea.hbm %s802_s7, 64 }
 0x302   :  { %p627_p9 = scmp.ne.s32.totalorder %s802_s7, %s626_s8  ;;  %p630_p10 = scmp.lt.u32.totalorder %s626_s8, %s802_s7 }
 0x304   :  { %p632_p11 = pnand %p630_p10, %p627_p9 }
 0x306   :  { %635 = shalt.err (!%p632_p11)
}
 0x307   :  { %396 = dma.vmem_to_hbm [thread:$0]  %s394_s28, 64, %s802_s7, [#allocation4]  }
 0x308   :  { %642 = dma.done.wait [#allocation4], 64  }
 0x309   :  { %643 = vsyncadd [#allocation4], 4294967232 }
 0x30a   :  { %400 = vsyncpa [#allocation3], 1 }
 0x30b   :  { %401 = vsyncpa [#allocation6], 1 }
 0x30c   :  { %402 = vsyncpa [#allocation9], 1 }
 0x30d   :  { %403 = vsyncpa [#allocation4], 1 }

</bundles_post_ra>
